<compile_context>
chip_gen: v7x
topology: tpu7x:2x2x1
jax: 0.10.0
libtpu: 0.0.40
codegen_flags: <defaults>
</compile_context>

<pallas_src>
import functools

import jax
import jax.numpy as jnp
from jax.experimental import pallas as pl
from jax.experimental.pallas import tpu as pltpu


def _round_up(x, m):
    return ((x + m - 1) // m) * m


def dqn_kernel(x_ref, w1_ref, b1_ref, w2_ref, b2_ref, w3_ref, b3_ref, o_ref):
    # One (TM, in_dim) batch tile through the fused 3-layer MLP.
    # bf16 matmul operands, f32 accumulation; elementwise math stays f32.
    x = x_ref[...]                                                     # (TM, 6) bf16
    h1 = jnp.dot(x, w1_ref[...], preferred_element_type=jnp.float32)
    h1 = jnp.maximum(h1 + b1_ref[...], 0.0)                            # ReLU (f32)
    h2 = jnp.dot(h1.astype(jnp.bfloat16), w2_ref[...],
                 preferred_element_type=jnp.float32)
    h2 = jnp.maximum(h2 + b2_ref[...], 0.0)                            # ReLU (f32)
    h3 = jnp.dot(h2.astype(jnp.bfloat16), w3_ref[...],
                 preferred_element_type=jnp.float32)
    o_ref[...] = jnp.tanh(h3 + b3_ref[...]).astype(o_ref.dtype)        # Tanh (f32)


@functools.partial(jax.jit, static_argnames=("block_m",))
def dqn_forward(x, params, *, block_m=256):
    w1, b1, w2, b2, w3, b3 = params
    batch, in_dim = x.shape
    hidden = w1.shape[1]
    out_dim = w3.shape[1]

    # Batch tile: >=256 rows fills the 256-wide MXU on v6e/v7x; tiny batches
    # just use one 8-aligned tile. Pad batch up to a tile multiple.
    tm = block_m if batch >= block_m else _round_up(batch, 8)
    padded = _round_up(batch, tm)
    if padded != batch:
        x = jnp.pad(x, ((0, padded - batch), (0, 0)))

    # bf16 matmul operands (halves weight DMA bytes, native MXU throughput).
    x_bf = x.astype(jnp.bfloat16)
    w1b, w2b, w3b = (w.astype(jnp.bfloat16) for w in (w1, w2, w3))

    const = lambda shape: pl.BlockSpec(shape, lambda i, _s=shape: (0,) * len(_s))

    flops = 2 * padded * (in_dim * hidden + hidden * hidden + hidden * out_dim)
    bytes_accessed = (
        x_bf.size * 2
        + (w1b.size + w2b.size + w3b.size) * 2
        + (b1.size + b2.size + b3.size) * 4
        + padded * out_dim * 4
    )

    # TODO(synk): if the output ever becomes a hot path at huge batch, present a
    # lane-dense (last dim multiple of 128) output slab instead of (TM, 4).
    out = pl.pallas_call(
        dqn_kernel,
        out_shape=jax.ShapeDtypeStruct((padded, out_dim), jnp.float32),
        grid=(padded // tm,),
        in_specs=[
            pl.BlockSpec((tm, in_dim), lambda i: (i, 0)),   # x: tiled over batch
            const(w1b.shape), const(b1.shape),              # weights/biases: VMEM-resident
            const(w2b.shape), const(b2.shape),
            const(w3b.shape), const(b3.shape),
        ],
        out_specs=pl.BlockSpec((tm, out_dim), lambda i: (i, 0)),
        compiler_params=pltpu.CompilerParams(
            dimension_semantics=("parallel",),              # shard batch tiles across TCs
        ),
        cost_estimate=pl.CostEstimate(
            flops=flops,
            transcendentals=padded * out_dim,               # tanh
            bytes_accessed=bytes_accessed,
        ),
    )(x_bf, w1b, b1, w2b, b2, w3b, b3)

    return out[:batch]


def dqn_reference(x, params):
    # Plain-JAX reference with the same bf16-operand / f32-accumulate math.
    w1, b1, w2, b2, w3, b3 = params
    bf, f32 = jnp.bfloat16, jnp.float32
    h1 = jnp.maximum(
        jnp.dot(x.astype(bf), w1.astype(bf), preferred_element_type=f32) + b1, 0.0)
    h2 = jnp.maximum(
        jnp.dot(h1.astype(bf), w2.astype(bf), preferred_element_type=f32) + b2, 0.0)
    h3 = jnp.dot(h2.astype(bf), w3.astype(bf), preferred_element_type=f32) + b3
    return jnp.tanh(h3)


def init_params(key, input_dim=6, hidden=128, output_dim=4):
    # Deterministic init mimicking PyTorch nn.Linear default:
    # U(-1/sqrt(fan_in), 1/sqrt(fan_in)) for both weights and biases.
    def linear(k, fan_in, fan_out):
        kw, kb = jax.random.split(k)
        bound = 1.0 / jnp.sqrt(fan_in)
        w = jax.random.uniform(kw, (fan_in, fan_out), jnp.float32, -bound, bound)
        b = jax.random.uniform(kb, (1, fan_out), jnp.float32, -bound, bound)
        return w, b

    k1, k2, k3 = jax.random.split(key, 3)
    w1, b1 = linear(k1, input_dim, hidden)
    w2, b2 = linear(k2, hidden, hidden)
    w3, b3 = linear(k3, hidden, output_dim)
    return (w1, b1, w2, b2, w3, b3)


if __name__ == "__main__":
    key = jax.random.PRNGKey(0)
    k_params, k_x1, k_x2 = jax.random.split(key, 3)

    input_dim, output_dim = 6, 4
    params = init_params(k_params, input_dim=input_dim, output_dim=output_dim)

    # Small RL-style batch (single 8-row tile).
    x_small = jax.random.normal(k_x1, (8, input_dim), jnp.float32)
    out_small = jax.block_until_ready(dqn_forward(x_small, params))
    assert out_small.shape == (8, output_dim)
    assert jnp.allclose(out_small, dqn_reference(x_small, params),
                        atol=2e-3, rtol=2e-3)

    # Larger, non-aligned batch (exercises padding + multi-tile parallel grid).
    x_big = jax.random.normal(k_x2, (300, input_dim), jnp.float32)
    out_big = jax.block_until_ready(dqn_forward(x_big, params))
    assert out_big.shape == (300, output_dim)
    assert jnp.allclose(out_big, dqn_reference(x_big, params),
                        atol=2e-3, rtol=2e-3)

    print("KERNEL_OK")
</pallas_src>

<mosaic_0001>
module attributes {stable_mosaic.version = 11 : i64} {
  func.func @dqn_kernel(%arg0: i32, %arg1: memref<8x6xbf16, #tpu.memory_space<vmem>>, %arg2: memref<6x128xbf16, #tpu.memory_space<vmem>>, %arg3: memref<1x128xf32, #tpu.memory_space<vmem>>, %arg4: memref<128x128xbf16, #tpu.memory_space<vmem>>, %arg5: memref<1x128xf32, #tpu.memory_space<vmem>>, %arg6: memref<128x4xbf16, #tpu.memory_space<vmem>>, %arg7: memref<1x4xf32, #tpu.memory_space<vmem>>, %arg8: memref<8x4xf32, #tpu.memory_space<vmem>>) attributes {dimension_semantics = [#tpu.dimension_semantics<parallel>], iteration_bounds = array<i64: 1>, scalar_prefetch = 0 : i64, scratch_operands = 0 : i64, tpu.core_type = #tpu.core_type<tc>, window_params = [{transform_indices = @transform_0, window_bounds = array<i64: 8, 6>}, {pipeline_mode = #tpu.pipeline_mode<synchronous>, transform_indices = @transform_1, window_bounds = array<i64: 6, 128>}, {pipeline_mode = #tpu.pipeline_mode<synchronous>, transform_indices = @transform_2, window_bounds = array<i64: 1, 128>}, {pipeline_mode = #tpu.pipeline_mode<synchronous>, transform_indices = @transform_3, window_bounds = array<i64: 128, 128>}, {pipeline_mode = #tpu.pipeline_mode<synchronous>, transform_indices = @transform_4, window_bounds = array<i64: 1, 128>}, {pipeline_mode = #tpu.pipeline_mode<synchronous>, transform_indices = @transform_5, window_bounds = array<i64: 128, 4>}, {pipeline_mode = #tpu.pipeline_mode<synchronous>, transform_indices = @transform_6, window_bounds = array<i64: 1, 4>}, {transform_indices = @transform_7, window_bounds = array<i64: 8, 4>}]} {
    %c0 = arith.constant 0 : index
    %c0_0 = arith.constant 0 : index
    %0 = vector.load %arg1[%c0, %c0_0] : memref<8x6xbf16, #tpu.memory_space<vmem>>, vector<8x6xbf16>
    %c0_1 = arith.constant 0 : index
    %c0_2 = arith.constant 0 : index
    %1 = vector.load %arg2[%c0_1, %c0_2] : memref<6x128xbf16, #tpu.memory_space<vmem>>, vector<6x128xbf16>
    %cst = arith.constant dense<0.000000e+00> : vector<8x128xf32>
    %2 = tpu.matmul %0, %1, %cst {dimension_numbers = #tpu.dot_dimension_numbers<[1], [0], [0], [1], [0, 0, 1, 1], [], []>} : vector<8x6xbf16>, vector<6x128xbf16>, vector<8x128xf32> -> vector<8x128xf32>
    %c0_3 = arith.constant 0 : index
    %c0_4 = arith.constant 0 : index
    %3 = vector.load %arg3[%c0_3, %c0_4] : memref<1x128xf32, #tpu.memory_space<vmem>>, vector<1x128xf32>
    %4 = vector.broadcast %3 : vector<1x128xf32> to vector<8x128xf32>
    %5 = arith.addf %2, %4 : vector<8x128xf32>
    %cst_5 = arith.constant 0.000000e+00 : f32
    %6 = vector.broadcast %cst_5 : f32 to vector<8x128xf32>
    %7 = arith.maximumf %5, %6 : vector<8x128xf32>
    %8 = arith.truncf %7 : vector<8x128xf32> to vector<8x128xbf16>
    %c0_6 = arith.constant 0 : index
    %c0_7 = arith.constant 0 : index
    %9 = vector.load %arg4[%c0_6, %c0_7] : memref<128x128xbf16, #tpu.memory_space<vmem>>, vector<128x128xbf16>
    %cst_8 = arith.constant dense<0.000000e+00> : vector<8x128xf32>
    %10 = tpu.matmul %8, %9, %cst_8 {dimension_numbers = #tpu.dot_dimension_numbers<[1], [0], [0], [1], [0, 0, 1, 1], [], []>} : vector<8x128xbf16>, vector<128x128xbf16>, vector<8x128xf32> -> vector<8x128xf32>
    %c0_9 = arith.constant 0 : index
    %c0_10 = arith.constant 0 : index
    %11 = vector.load %arg5[%c0_9, %c0_10] : memref<1x128xf32, #tpu.memory_space<vmem>>, vector<1x128xf32>
    %12 = vector.broadcast %11 : vector<1x128xf32> to vector<8x128xf32>
    %13 = arith.addf %10, %12 : vector<8x128xf32>
    %cst_11 = arith.constant 0.000000e+00 : f32
    %14 = vector.broadcast %cst_11 : f32 to vector<8x128xf32>
    %15 = arith.maximumf %13, %14 : vector<8x128xf32>
    %16 = arith.truncf %15 : vector<8x128xf32> to vector<8x128xbf16>
    %c0_12 = arith.constant 0 : index
    %c0_13 = arith.constant 0 : index
    %17 = vector.load %arg6[%c0_12, %c0_13] : memref<128x4xbf16, #tpu.memory_space<vmem>>, vector<128x4xbf16>
    %cst_14 = arith.constant dense<0.000000e+00> : vector<8x4xf32>
    %18 = tpu.matmul %16, %17, %cst_14 {dimension_numbers = #tpu.dot_dimension_numbers<[1], [0], [0], [1], [0, 0, 1, 1], [], []>} : vector<8x128xbf16>, vector<128x4xbf16>, vector<8x4xf32> -> vector<8x4xf32>
    %c0_15 = arith.constant 0 : index
    %c0_16 = arith.constant 0 : index
    %19 = vector.load %arg7[%c0_15, %c0_16] : memref<1x4xf32, #tpu.memory_space<vmem>>, vector<1x4xf32>
    %20 = vector.broadcast %19 : vector<1x4xf32> to vector<8x4xf32>
    %21 = arith.addf %18, %20 : vector<8x4xf32>
    %22 = math.tanh %21 : vector<8x4xf32>
    %c0_17 = arith.constant 0 : index
    %c0_18 = arith.constant 0 : index
    %23 = vector.load %arg8[%c0_17, %c0_18] : memref<8x4xf32, #tpu.memory_space<vmem>>, vector<8x4xf32>
    tpu.vector_store %arg8[%c0_17, %c0_18], %22 {strides = array<i32>} : memref<8x4xf32, #tpu.memory_space<vmem>>, vector<8x4xf32>,
    return
  }
  func.func @transform_0(%arg0: i32) -> (i32, i32) {
    %c0_i32 = arith.constant 0 : i32
    %c0_i32_0 = arith.constant 0 : i32
    return %arg0, %c0_i32 : i32, i32
  }
  func.func @transform_1(%arg0: i32) -> (i32, i32) {
    %c0_i32 = arith.constant 0 : i32
    %c0_i32_0 = arith.constant 0 : i32
    %c0_i32_1 = arith.constant 0 : i32
    return %c0_i32, %c0_i32_0 : i32, i32
  }
  func.func @transform_2(%arg0: i32) -> (i32, i32) {
    %c0_i32 = arith.constant 0 : i32
    %c0_i32_0 = arith.constant 0 : i32
    %c0_i32_1 = arith.constant 0 : i32
    return %c0_i32, %c0_i32_0 : i32, i32
  }
  func.func @transform_3(%arg0: i32) -> (i32, i32) {
    %c0_i32 = arith.constant 0 : i32
    %c0_i32_0 = arith.constant 0 : i32
    %c0_i32_1 = arith.constant 0 : i32
    return %c0_i32, %c0_i32_0 : i32, i32
  }
  func.func @transform_4(%arg0: i32) -> (i32, i32) {
    %c0_i32 = arith.constant 0 : i32
    %c0_i32_0 = arith.constant 0 : i32
    %c0_i32_1 = arith.constant 0 : i32
    return %c0_i32, %c0_i32_0 : i32, i32
  }
  func.func @transform_5(%arg0: i32) -> (i32, i32) {
    %c0_i32 = arith.constant 0 : i32
    %c0_i32_0 = arith.constant 0 : i32
    %c0_i32_1 = arith.constant 0 : i32
    return %c0_i32, %c0_i32_0 : i32, i32
  }
  func.func @transform_6(%arg0: i32) -> (i32, i32) {
    %c0_i32 = arith.constant 0 : i32
    %c0_i32_0 = arith.constant 0 : i32
    %c0_i32_1 = arith.constant 0 : i32
    return %c0_i32, %c0_i32_0 : i32, i32
  }
  func.func @transform_7(%arg0: i32) -> (i32, i32) {
    %c0_i32 = arith.constant 0 : i32
    %c0_i32_0 = arith.constant 0 : i32
    return %arg0, %c0_i32 : i32, i32
  }
}

</mosaic_0001>

<bundles_post_ra>
// kernel: dqn_forward.1
= control target key start
LH: loop header
LB: loop body
LE: loop exit
PB: predicated region body
PF: predicated region fallthrough
CT: control target
= control target key end

     0   :  { %vm40_vm0 = vcmask 1042432   ;;  %v423_v0 = vmov 0.0   ;;  %vm424_vm1 = vmmov 0   ;;  %vm36_vm2 = vcmask 48128   ;;  %s551_s1 = inlined_call_operand.vmem [shape: bf16[6,128], index: 1, kind: input, shape index: {}]   ;;  %s552_s0 = inlined_call_operand.vmem [shape: bf16[8,6], index: 0, kind: input, shape index: {}]   ;;  %s553_s3 = inlined_call_operand.vmem [shape: bf16[128,128], index: 3, kind: input, shape index: {}]   ;;  %s554_s5 = inlined_call_operand.vmem [shape: bf16[128,4], index: 5, kind: input, shape index: {}]   ;;  %s555_s2 = inlined_call_operand.vmem [shape: f32[1,128], index: 2, kind: input, shape index: {}]   ;;  %s556_s4 = inlined_call_operand.vmem [shape: f32[1,128], index: 4, kind: input, shape index: {}]   ;;  %s557_s6 = inlined_call_operand.vmem [shape: f32[1,4], index: 6, kind: input, shape index: {}]   ;;  %s558_s7 = inlined_call_operand.vmem [shape: f32[8,4], index: 7, kind: output, shape index: {}]  }
   0x1   :  { %357 = vmatprep.subr.bf16.mxu0 %v423_v0  ;;  %v28_v1 = vld [vmem:[%s551_s1] sm:$0x7]  ;;  %359 = vmatprep.mubr.msk.bf16.mxu0 %vm424_vm1, %v423_v0  ;;  %v406_v5 = vld [vmem:[%s553_s3 + $0x8] sm:$0xff]   ;;  %v407_v6 = vld [vmem:[%s553_s3 + $0x10] sm:$0xff]   ;;  %vm311_vm3 = vcmask 31744  }
   0x2   :  { %v42_v2 = vsel %vm40_vm0, %v28_v1, 0  ;;  %363 = vmatprep.subr.bf16.mxu1 %v423_v0  ;;  %v405_v3 = vld [vmem:[%s553_s3] sm:$0xff]   ;;  %379 = vmatprep.mubr.msk.bf16.mxu1 %vm424_vm1, %v423_v0  ;;  %v408_v7 = vld [vmem:[%s553_s3 + $0x18] sm:$0xff]   ;;  %v410_v9 = vld [vmem:[%s553_s3 + $0x28] sm:$0xff]  }
   0x3   :  { %358 = vmatpush3.bf16.msra.mxu0 %v42_v2  ;;  %v27_v4 = vld [vmem:[%s552_s0] sm:$0xf]  ;;  %364 = vmatpush3.bf16.msra.mxu1 %v405_v3  ;;  %v411_v10 = vld [vmem:[%s553_s3 + $0x30] sm:$0xff]   ;;  %v412_v11 = vld [vmem:[%s553_s3 + $0x38] sm:$0xff]  }
   0x4   :  { %383 = vmatprep.subr.bf16.mxu0 %v423_v0  ;;  %365 = vmatprep.subr.bf16.mxu1 %v423_v0  ;;  %v409_v8 = vld [vmem:[%s553_s3 + $0x20] sm:$0xff]   ;;  %v414_v13 = vld [vmem:[%s554_s5 + $0x8] sm:$0xff]   ;;  %v415_v14 = vld [vmem:[%s554_s5 + $0x10] sm:$0xff]  }
   0x5   :  { %v413_v12 = vld [vmem:[%s554_s5] sm:$0xff]   ;;  %v416_v15 = vld [vmem:[%s554_s5 + $0x18] sm:$0xff]   ;;  %v418_v17 = vld [vmem:[%s554_s5 + $0x28] sm:$0xff]  }
   0x6   :  { %360 = vmatmul.mubr.msk.bf16.vlgmr.msra.gmra.mrb[0].mxu0 %vm36_vm2, %v27_v4  ;;  %v417_v16 = vld [vmem:[%s554_s5 + $0x20] sm:$0xff]   ;;  %v419_v26 = vld [vmem:[%s554_s5 + $0x30] sm:$0xff]   ;;  %v420_v27 = vld [vmem:[%s554_s5 + $0x38] sm:$0xff]  }
   0x7   :  { %399 = vmatprep.mubr.msk.bf16.mxu0 %vm424_vm1, %v423_v0  ;;  %366 = vmatpush3.bf16.msra.mxu1 %v406_v5  ;;  %v317_v18 = vld [vmem:[%s555_s2] ss:$0 sm:$0xff] }
   0x8   :  { %367 = vmatprep.subr.bf16.mxu1 %v423_v0  ;;  %384 = vmatpush3.bf16.msra.mxu0 %v413_v12  ;;  %v319_v28 = vld [vmem:[%s556_s4] ss:$0 sm:$0xff] }
   0x9   :  { %385 = vmatprep.subr.bf16.mxu0 %v423_v0  ;;  %v328_v36 = vld [vmem:[%s557_s6] ss:$0 sm:$0xff] }
   0xb   :  { %368 = vmatpush3.bf16.msra.mxu1 %v407_v6 }
   0xc   :  { %369 = vmatprep.subr.bf16.mxu1 %v423_v0  ;;  %386 = vmatpush3.bf16.msra.mxu0 %v414_v13 }
   0xd   :  { %387 = vmatprep.subr.bf16.mxu0 %v423_v0 }
   0xf   :  { %370 = vmatpush3.bf16.msra.mxu1 %v408_v7 }
  0x10   :  { %371 = vmatprep.subr.bf16.mxu1 %v423_v0  ;;  %388 = vmatpush3.bf16.msra.mxu0 %v415_v14 }
  0x11   :  { %389 = vmatprep.subr.bf16.mxu0 %v423_v0 }
  0x13   :  { %372 = vmatpush3.bf16.msra.mxu1 %v409_v8 }
  0x14   :  { %373 = vmatprep.subr.bf16.mxu1 %v423_v0  ;;  %390 = vmatpush3.bf16.msra.mxu0 %v416_v15 }
  0x15   :  { %391 = vmatprep.subr.bf16.mxu0 %v423_v0 }
  0x17   :  { %374 = vmatpush3.bf16.msra.mxu1 %v410_v9 }
  0x18   :  { %375 = vmatprep.subr.bf16.mxu1 %v423_v0  ;;  %392 = vmatpush3.bf16.msra.mxu0 %v417_v16 }
  0x19   :  { %393 = vmatprep.subr.bf16.mxu0 %v423_v0 }
  0x1b   :  { %376 = vmatpush3.bf16.msra.mxu1 %v411_v10 }
  0x1c   :  { %377 = vmatprep.subr.bf16.mxu1 %v423_v0  ;;  %394 = vmatpush3.bf16.msra.mxu0 %v418_v17 }
  0x1d   :  { %395 = vmatprep.subr.bf16.mxu0 %v423_v0 }
  0x1f   :  { %378 = vmatpush3.bf16.msra.mxu1 %v412_v11 }
  0x20   :  { %396 = vmatpush3.bf16.msra.mxu0 %v419_v26 }
  0x21   :  { %397 = vmatprep.subr.bf16.mxu0 %v423_v0 }
  0x24   :  { %398 = vmatpush3.bf16.msra.mxu0 %v420_v27 }
  0xd9   :  { %v78_v19 = vpop.f32.mrb[0].mxu0 }
  0xda   :  { %v79_v20 = vadd.f32 %v317_v18, %v78_v19  ;;  %v361_v21 = vpop.f32.mrb[1].mxu0 }
  0xdb   :  { %v81_v22 = vpop.f32.mrb[2].mxu0 }
  0xdc   :  { %v84_v23 = vmax.f32 %v79_v20, 0.0  ;;  %v362_v24 = vpop.f32.mrb[3].mxu0 }
  0xde   :  { %v85_v25 = vpack.c.bf16 %v84_v23, %v84_v23 }
  0xe0   :  { %380 = vmatmul.mubr.bf16.vlgmr.msra.gmra.mrb[0].mxu1 %v85_v25 }
 0x1b3   :  { %v191_v29 = vpop.f32.mrb[0].mxu1 }
 0x1b4   :  { %v192_v30 = vadd.f32 %v319_v28, %v191_v29  ;;  %v381_v31 = vpop.f32.mrb[1].mxu1 }
 0x1b5   :  { %v194_v32 = vpop.f32.mrb[2].mxu1 }
 0x1b6   :  { %v197_v33 = vmax.f32 %v192_v30, 0.0  ;;  %v382_v34 = vpop.f32.mrb[3].mxu1 }
 0x1b8   :  { %v198_v35 = vpack.c.bf16 %v197_v33, %v197_v33 }
 0x1ba   :  { %400 = vmatmul.mubr.bf16.vlgmr.msra.gmra.mrb[4].mxu0 %v198_v35 }
 0x28d   :  { %v304_v37 = vpop.f32.mrb[4].mxu0 }
 0x28e   :  { %v305_v38 = vadd.f32 %v328_v36, %v304_v37  ;;  %v401_v39 = vpop.f32.mrb[5].mxu0 }
 0x28f   :  { %v307_v40 = vpop.f32.mrb[6].mxu0 }
 0x290   :  { %421 = vtanh.f32 %v305_v38  ;;  %v402_v41 = vpop.f32.mrb[7].mxu0 }
 0x29a   :  { %v422_v42 = vpop.eup %421 }
 0x29b   :  { %312 = vst.msk [vmem:[%s558_s7] sm:$0xff] %vm311_vm3, %v422_v42 }

</bundles_post_ra>
